<compile_context>
chip_gen: v7x
topology: tpu7x:2x2x1
jax: 0.10.0
libtpu: 0.0.40
codegen_flags: <defaults>
</compile_context>

<pallas_src>
import functools

import jax
import jax.numpy as jnp
from jax import lax
from jax.experimental import pallas as pl
from jax.experimental.pallas import tpu as pltpu


def _block_attn_kernel(x_ref, w_ref, o_ref, *, num_heads, head_size):
    # x_ref: (T, C)            one batch element (batch dim squeezed away)
    # w_ref: (3*NH*H, C)       fused [q | k | v] projection weights, row-major
    #                          per head: row n*H + h == W[n][:, h]
    # o_ref: (T, NH*H)         concatenated multi-head output
    x = x_ref[...]                                               # (T, C)
    w = w_ref[...]                                               # (3*NHH, C)
    T, C = x.shape
    H = head_size
    NH = num_heads
    NHH = NH * H

    # One fused projection matmul for all heads and all of q/k/v:
    #   qkv[r, t] = sum_c w[r, c] * x[t, c]        -> (3*NHH, T)
    # Rows come out head-major, so the per-head views below are free
    # (sublane-tile-aligned leading-dim slices + sublane-split reshapes,
    # no lane shuffles).
    qkv = lax.dot_general(w, x, (((1,), (1,)), ((), ())),
                          preferred_element_type=jnp.float32)    # (3*NHH, T)

    q = qkv[0 * NHH:1 * NHH].reshape(NH, H, T)                   # q[n,h,t]
    k = qkv[1 * NHH:2 * NHH].reshape(NH, H, T)                   # k[n,h,t]
    v = qkv[2 * NHH:3 * NHH].reshape(NH, H, T)                   # v[n,h,t]

    # Scale uses C (embedding dim), mirroring the PyTorch source
    # (wei = q @ k.T * C ** -0.5), not head_size.
    scale = jnp.float32(C) ** jnp.float32(-0.5)

    # All-head score matmul in one batched dot_general:
    #   s[n, i, j] = sum_h q[n, h, i] * k[n, h, j]   -> (NH, T, T)
    q_t = jnp.swapaxes(q, 1, 2)                                  # (NH, T, H)
    s = jnp.einsum('nth,nhj->ntj', q_t, k,
                   preferred_element_type=jnp.float32) * scale   # (NH, T, T)

    # Causal mask, built once per invocation; broadcast over heads.
    row = lax.broadcasted_iota(jnp.int32, (T, T), 0)
    col = lax.broadcasted_iota(jnp.int32, (T, T), 1)
    mask = (col <= row)[None, :, :]                              # (1, T, T)

    # Numerically safe masked softmax: finite fill, no -inf arithmetic,
    # EXACT denominator (approx reciprocal previously broke the tolerance).
    s = jnp.where(mask, s, jnp.float32(-1e30))
    m = jnp.max(s, axis=-1, keepdims=True)
    p = jnp.where(mask, jnp.exp(s - m), jnp.float32(0.0))
    denom = jnp.sum(p, axis=-1, keepdims=True)
    wei = p / denom                                              # (NH, T, T)

    # All-head PV matmul in one batched dot_general (contract key dim):
    #   out[n, t, h] = sum_j wei[n, t, j] * v[n, h, j]  -> (NH, T, H)
    out = jnp.einsum('ntj,nhj->nth', wei, v,
                     preferred_element_type=jnp.float32)

    # Assemble the lane-concatenated (T, NH*H) slab once (head-major columns,
    # matching torch.cat(..., dim=-1)) and issue a single wide store.
    out_cat = jnp.concatenate([out[n] for n in range(NH)], axis=-1)
    o_ref[...] = out_cat.astype(o_ref.dtype)
    # TODO(synk): PyTorch Block.forward has no return statement (returns None)
    # and never applies self.ffwd; we return the attention output instead.


def prepare_qkv_weights(wq, wk, wv):
    """Parameter-prep (run ONCE, not per forward call).

    wq/wk/wv: (num_heads, C, H) per-head weights in `x @ W` convention.
    Returns the fused (3*num_heads*H, C) slab consumed by the kernel, with
    row n*H + h of each q/k/v block equal to W[n][:, h].
    """
    NH, C, H = wq.shape

    def _rows(w):                       # (NH, C, H) -> (NH*H, C)
        return jnp.transpose(w, (0, 2, 1)).reshape(NH * H, C)

    return jnp.concatenate([_rows(wq), _rows(wk), _rows(wv)], axis=0)


def block_forward(x, w_qkv, num_heads, head_size):
    """x: (B, T, C); w_qkv: (3*num_heads*H, C). Returns (B, T, num_heads*H)."""
    B, T, C = x.shape
    NHH = num_heads * head_size

    kernel = functools.partial(_block_attn_kernel,
                               num_heads=num_heads, head_size=head_size)

    return pl.pallas_call(
        kernel,
        out_shape=jax.ShapeDtypeStruct((B, T, NHH), x.dtype),
        grid_spec=pltpu.PrefetchScalarGridSpec(
            num_scalar_prefetch=0,
            grid=(B,),                   # B=2 'parallel' -> one step per TC on v7x
            in_specs=[
                pl.BlockSpec((pl.Squeezed(), T, C), lambda b: (b, 0, 0)),
                # Full weight slab, constant block index -> stays VMEM-resident.
                pl.BlockSpec((3 * NHH, C), lambda b: (0, 0)),
            ],
            out_specs=pl.BlockSpec((pl.Squeezed(), T, NHH), lambda b: (b, 0, 0)),
        ),
        compiler_params=pltpu.CompilerParams(
            dimension_semantics=("parallel",)),
    )(x, w_qkv)


def reference_forward(x, wk, wq, wv):
    """Pure-JAX reference mirroring the PyTorch semantics (f32-exact matmuls)."""
    B, T, C = x.shape
    hp = lax.Precision.HIGHEST
    mask = jnp.tril(jnp.ones((T, T), dtype=bool))
    outs = []
    for h in range(wk.shape[0]):
        k = jnp.einsum('btc,ch->bth', x, wk[h], precision=hp)
        q = jnp.einsum('btc,ch->bth', x, wq[h], precision=hp)
        v = jnp.einsum('btc,ch->bth', x, wv[h], precision=hp)
        wei = jnp.einsum('bth,bjh->btj', q, k, precision=hp) * (C ** -0.5)
        wei = jnp.where(mask, wei, -jnp.inf)
        wei = jax.nn.softmax(wei, axis=-1)
        outs.append(jnp.einsum('btj,bjh->bth', wei, v, precision=hp))
    return jnp.concatenate(outs, axis=-1)


if __name__ == "__main__":
    # Small shapes consistent with the module.
    B, T, C = 2, 8, 32          # batch, block_size (seq), embedding_dim
    H, num_heads = 8, 8         # head_size, num_heads

    key = jax.random.PRNGKey(0)
    kx, kk, kq, kv = jax.random.split(key, 4)
    x = jax.random.normal(kx, (B, T, C), dtype=jnp.float32)
    # Deterministic synthetic weights (nn.Linear(C, H, bias=False) per head),
    # stored pre-transposed as (num_heads, C, H) so the math is x @ W.
    scale = 1.0 / jnp.sqrt(jnp.float32(C))
    wk = jax.random.uniform(kk, (num_heads, C, H), jnp.float32, -scale, scale)
    wq = jax.random.uniform(kq, (num_heads, C, H), jnp.float32, -scale, scale)
    wv = jax.random.uniform(kv, (num_heads, C, H), jnp.float32, -scale, scale)

    # Hoisted parameter prep: fused weight slab built once, outside the forward.
    w_qkv = jax.block_until_ready(prepare_qkv_weights(wq, wk, wv))

    out = jax.block_until_ready(block_forward(x, w_qkv, num_heads, H))
    ref = jax.block_until_ready(reference_forward(x, wk, wq, wv))

    assert out.shape == (B, T, num_heads * H), out.shape
    max_err = float(jnp.max(jnp.abs(out - ref)))
    assert jnp.allclose(out, ref, atol=1e-3, rtol=1e-3), max_err
    print("KERNEL_OK")
</pallas_src>

<mosaic_0001>
module attributes {stable_mosaic.version = 11 : i64} {
  func.func @_block_attn_kernel(%arg0: i32, %arg1: memref<1x8x32xf32, #tpu.memory_space<vmem>>, %arg2: memref<192x32xf32, #tpu.memory_space<vmem>>, %arg3: memref<1x8x64xf32, #tpu.memory_space<vmem>>) attributes {dimension_semantics = [#tpu.dimension_semantics<parallel>], iteration_bounds = array<i64: 2>, scalar_prefetch = 0 : i64, scratch_operands = 0 : i64, tpu.core_type = #tpu.core_type<tc>, window_params = [{transform_indices = @transform_0, window_bounds = array<i64: 1, 8, 32>}, {pipeline_mode = #tpu.pipeline_mode<synchronous>, transform_indices = @transform_1, window_bounds = array<i64: 192, 32>}, {transform_indices = @transform_2, window_bounds = array<i64: 1, 8, 64>}]} {
    %c0 = arith.constant 0 : index
    %c0_0 = arith.constant 0 : index
    %c0_1 = arith.constant 0 : index
    %0 = vector.load %arg1[%c0, %c0_0, %c0_1] : memref<1x8x32xf32, #tpu.memory_space<vmem>>, vector<1x8x32xf32>
    %1 = vector.shape_cast %0 : vector<1x8x32xf32> to vector<8x32xf32>
    %c0_2 = arith.constant 0 : index
    %c0_3 = arith.constant 0 : index
    %2 = vector.load %arg2[%c0_2, %c0_3] : memref<192x32xf32, #tpu.memory_space<vmem>>, vector<192x32xf32>
    %cst = arith.constant dense<0.000000e+00> : vector<192x8xf32>
    %3 = tpu.matmul %2, %1, %cst {dimension_numbers = #tpu.dot_dimension_numbers<[1], [1], [0], [0], [0, 0, 1, 0], [], []>} : vector<192x32xf32>, vector<8x32xf32>, vector<192x8xf32> -> vector<192x8xf32>
    %4 = vector.extract_strided_slice %3 {offsets = [0, 0], sizes = [64, 8], strides = [1, 1]} : vector<192x8xf32> to vector<64x8xf32>
    %5 = vector.shape_cast %4 : vector<64x8xf32> to vector<8x8x8xf32>
    %6 = vector.extract_strided_slice %3 {offsets = [64, 0], sizes = [64, 8], strides = [1, 1]} : vector<192x8xf32> to vector<64x8xf32>
    %7 = vector.shape_cast %6 : vector<64x8xf32> to vector<8x8x8xf32>
    %8 = vector.extract_strided_slice %3 {offsets = [128, 0], sizes = [64, 8], strides = [1, 1]} : vector<192x8xf32> to vector<64x8xf32>
    %9 = vector.shape_cast %8 : vector<64x8xf32> to vector<8x8x8xf32>
    %cst_4 = arith.constant 3.200000e+01 : f32
    %cst_5 = arith.constant -5.000000e-01 : f32
    %10 = math.powf %cst_4, %cst_5 : f32
    %11 = tpu.transpose %5, [0, 2, 1] : vector<8x8x8xf32> -> vector<8x8x8xf32>
    "tpu.trace_start"() <{level = 10 : i32, message = "nth,nhj->ntj"}> : () -> ()
    %cst_6 = arith.constant dense<0.000000e+00> : vector<8x8x8xf32>
    %12 = tpu.matmul %11, %7, %cst_6 {dimension_numbers = #tpu.dot_dimension_numbers<[2], [1], [1], [2], [0, 0, 0, 1, 1, 2], [0], [0]>} : vector<8x8x8xf32>, vector<8x8x8xf32>, vector<8x8x8xf32> -> vector<8x8x8xf32>
    "tpu.trace_stop"() : () -> ()
    %13 = vector.broadcast %10 : f32 to vector<8x8x8xf32>
    %14 = arith.mulf %12, %13 : vector<8x8x8xf32>
    %15 = tpu.iota {dimensions = array<i32: 0>} : vector<8x8xi32>
    %16 = tpu.iota {dimensions = array<i32: 1>} : vector<8x8xi32>
    %17 = arith.cmpi sle, %16, %15 : vector<8x8xi32>
    %18 = vector.shape_cast %17 : vector<8x8xi1> to vector<1x8x8xi1>
    %cst_7 = arith.constant -1.000000e+30 : f32
    %19 = vector.shape_cast %18 : vector<1x8x8xi1> to vector<1x8x8xi1>
    %20 = vector.broadcast %19 : vector<1x8x8xi1> to vector<8x8x8xi1>
    %21 = vector.broadcast %cst_7 : f32 to vector<8x8x8xf32>
    %22 = arith.select %20, %14, %21 : vector<8x8x8xi1>, vector<8x8x8xf32>
    %cst_8 = arith.constant dense<0xFF800000> : vector<8x8xf32>
    %23 = vector.multi_reduction <maximumf>, %22, %cst_8 [2] : vector<8x8x8xf32> to vector<8x8xf32>
    %24 = vector.shape_cast %23 : vector<8x8xf32> to vector<8x8x1xf32>
    %25 = vector.broadcast %24 : vector<8x8x1xf32> to vector<8x8x8xf32>
    %26 = arith.subf %22, %25 : vector<8x8x8xf32>
    %27 = math.exp %26 : vector<8x8x8xf32>
    %cst_9 = arith.constant 0.000000e+00 : f32
    %28 = vector.shape_cast %18 : vector<1x8x8xi1> to vector<1x8x8xi1>
    %29 = vector.broadcast %28 : vector<1x8x8xi1> to vector<8x8x8xi1>
    %30 = vector.broadcast %cst_9 : f32 to vector<8x8x8xf32>
    %31 = arith.select %29, %27, %30 : vector<8x8x8xi1>, vector<8x8x8xf32>
    %cst_10 = arith.constant dense<0.000000e+00> : vector<8x8xf32>
    %32 = vector.multi_reduction <add>, %31, %cst_10 [2] : vector<8x8x8xf32> to vector<8x8xf32>
    %33 = vector.shape_cast %32 : vector<8x8xf32> to vector<8x8x1xf32>
    %34 = vector.broadcast %33 : vector<8x8x1xf32> to vector<8x8x8xf32>
    %35 = arith.divf %31, %34 : vector<8x8x8xf32>
    "tpu.trace_start"() <{level = 10 : i32, message = "ntj,nhj->nth"}> : () -> ()
    %cst_11 = arith.constant dense<0.000000e+00> : vector<8x8x8xf32>
    %36 = tpu.matmul %35, %9, %cst_11 {dimension_numbers = #tpu.dot_dimension_numbers<[2], [2], [1], [1], [0, 0, 0, 1, 1, 1], [0], [0]>} : vector<8x8x8xf32>, vector<8x8x8xf32>, vector<8x8x8xf32> -> vector<8x8x8xf32>
    "tpu.trace_stop"() : () -> ()
    %37 = vector.extract_strided_slice %36 {offsets = [0, 0, 0], sizes = [1, 8, 8], strides = [1, 1, 1]} : vector<8x8x8xf32> to vector<1x8x8xf32>
    %38 = vector.shape_cast %37 : vector<1x8x8xf32> to vector<8x8xf32>
    %39 = vector.extract_strided_slice %36 {offsets = [1, 0, 0], sizes = [1, 8, 8], strides = [1, 1, 1]} : vector<8x8x8xf32> to vector<1x8x8xf32>
    %40 = vector.shape_cast %39 : vector<1x8x8xf32> to vector<8x8xf32>
    %41 = vector.extract_strided_slice %36 {offsets = [2, 0, 0], sizes = [1, 8, 8], strides = [1, 1, 1]} : vector<8x8x8xf32> to vector<1x8x8xf32>
    %42 = vector.shape_cast %41 : vector<1x8x8xf32> to vector<8x8xf32>
    %43 = vector.extract_strided_slice %36 {offsets = [3, 0, 0], sizes = [1, 8, 8], strides = [1, 1, 1]} : vector<8x8x8xf32> to vector<1x8x8xf32>
    %44 = vector.shape_cast %43 : vector<1x8x8xf32> to vector<8x8xf32>
    %45 = vector.extract_strided_slice %36 {offsets = [4, 0, 0], sizes = [1, 8, 8], strides = [1, 1, 1]} : vector<8x8x8xf32> to vector<1x8x8xf32>
    %46 = vector.shape_cast %45 : vector<1x8x8xf32> to vector<8x8xf32>
    %47 = vector.extract_strided_slice %36 {offsets = [5, 0, 0], sizes = [1, 8, 8], strides = [1, 1, 1]} : vector<8x8x8xf32> to vector<1x8x8xf32>
    %48 = vector.shape_cast %47 : vector<1x8x8xf32> to vector<8x8xf32>
    %49 = vector.extract_strided_slice %36 {offsets = [6, 0, 0], sizes = [1, 8, 8], strides = [1, 1, 1]} : vector<8x8x8xf32> to vector<1x8x8xf32>
    %50 = vector.shape_cast %49 : vector<1x8x8xf32> to vector<8x8xf32>
    %51 = vector.extract_strided_slice %36 {offsets = [7, 0, 0], sizes = [1, 8, 8], strides = [1, 1, 1]} : vector<8x8x8xf32> to vector<1x8x8xf32>
    %52 = vector.shape_cast %51 : vector<1x8x8xf32> to vector<8x8xf32>
    %53 = tpu.concatenate %38, %40, %42, %44, %46, %48, %50, %52 in 1 : vector<8x8xf32>, vector<8x8xf32>, vector<8x8xf32>, vector<8x8xf32>, vector<8x8xf32>, vector<8x8xf32>, vector<8x8xf32>, vector<8x8xf32> -> vector<8x64xf32>
    %c0_12 = arith.constant 0 : index
    %c0_13 = arith.constant 0 : index
    %c0_14 = arith.constant 0 : index
    %54 = vector.load %arg3[%c0_12, %c0_13, %c0_14] : memref<1x8x64xf32, #tpu.memory_space<vmem>>, vector<1x8x64xf32>
    %55 = vector.shape_cast %54 : vector<1x8x64xf32> to vector<8x64xf32>
    %56 = vector.shape_cast %53 : vector<8x64xf32> to vector<1x8x64xf32>
    tpu.vector_store %arg3[%c0_12, %c0_13, %c0_14], %56 {strides = array<i32>} : memref<1x8x64xf32, #tpu.memory_space<vmem>>, vector<1x8x64xf32>,
    return
  }
  func.func @transform_0(%arg0: i32) -> (i32, i32, i32) {
    %c0_i32 = arith.constant 0 : i32
    %c0_i32_0 = arith.constant 0 : i32
    %c0_i32_1 = arith.constant 0 : i32
    return %arg0, %c0_i32, %c0_i32_0 : i32, i32, i32
  }
  func.func @transform_1(%arg0: i32) -> (i32, i32) {
    %c0_i32 = arith.constant 0 : i32
    %c0_i32_0 = arith.constant 0 : i32
    %c0_i32_1 = arith.constant 0 : i32
    return %c0_i32, %c0_i32_0 : i32, i32
  }
  func.func @transform_2(%arg0: i32) -> (i32, i32, i32) {
    %c0_i32 = arith.constant 0 : i32
    %c0_i32_0 = arith.constant 0 : i32
    %c0_i32_1 = arith.constant 0 : i32
    return %arg0, %c0_i32, %c0_i32_0 : i32, i32, i32
  }
}

</mosaic_0001>

<bundles_post_ra>
// kernel: tpu_custom_call.1
= control target key start
LH: loop header
LB: loop body
LE: loop exit
PB: predicated region body
PF: predicated region fallthrough
CT: control target
= control target key end

     0   :  { %7 = vsyncpa [#allocation3], 0  ;;  %s2847_s0 = inlined_call_operand.vmem [shape: f32[2,8,32], index: 0, kind: input, shape index: {}]   ;;  %s2848_s1 = inlined_call_operand.vmem [shape: f32[192,32], index: 1, kind: input, shape index: {}]   ;;  %s2849_s2 = inlined_call_operand.hbm [shape: f32[2,8,64], index: 2, kind: output, shape index: {}]  }
   0x1   :  { %9 = vsyncpa [#allocation3 + $0x1], 0  ;;  %s2511_s9 = smov 0   ;;  %s2513_s10 = smov 0  }
   0x2   :  { %s2515_s11 = smov 0   ;;  %s2517_s12 = smov 0  }
   0x3 LB: > { %s2532_s13 = sadd.s32 4294967295, %s2484_s12   ;;  %s2108_s14 = sadd.s32 4294967294, %s2484_s12   ;;  %s2484_s12 = sphi %s2517_s12, %s2857_s12   ;;  %s2480_s11 = sphi %s2515_s11, %s2856_s11   ;;  %s2476_s10 = sphi %s2513_s10, %s2855_s10   ;;  %s2472_s9 = sphi %s2511_s9, %s2854_s9  }
   0x4   : > { %s2536_s15 = sadd.s32 1, %s2484_s12   ;;  %s69_s16 = sadd.s32 1, %s2480_s11 }
   0x5   : > { %s66_s17 = ssub.s32 %s2484_s12, %s2536_s15  ;;  %p79_p0 = scmp.ne.s32.totalorder %s2480_s11, %s2476_s10 }
   0x6   : > { %p67_p1 = scmp.eq.s32.totalorder %s66_s17, 0  ;;  %p80_p2 = scmp.eq.s32.totalorder %s2532_s13, 1 }
   0x7   : > { %p85_p3 = scmp.ne.s32.totalorder %s2476_s10, %s2472_s9  ;;  %p86_p4 = scmp.eq.s32.totalorder %s2108_s14, 1 }
   0x8   : > { %s2547_s18 = scalar_select %p67_p1, %s2480_s11, %s69_s16  }
   0x9   : > { %p2549_p5 = por %p80_p2, %p79_p0  ;;  %p2553_p6 = por %p86_p4, %p85_p3 }
   0xa   : > { %p2111_p7 = scmp.ge.s32.totalorder %s2484_s12, 1  ;;  %p114_p8 = scmp.lt.s32.totalorder %s2484_s12, 3 }
   0xc   : > { %p115_p9 = pnand %p2111_p7, %p114_p8 }
   0xd   : > { %p135_p10 = scmp.lt.s32.totalorder (!%p115_p9), %s2532_s13, 1  ;;  %vm164_vm0 = vcmask (!%p115_p9), 261120   ;;  %v140_v0 = vld [vmem:[%s2848_s1] sm:$0xff] (!%p115_p9)  ;;  %v141_v2 = vld [vmem:[%s2848_s1 + $0x8] sm:$0xff] (!%p115_p9)  ;;  %v142_v3 = vld [vmem:[%s2848_s1 + $0x10] sm:$0xff] (!%p115_p9)  ;;  %v2486_v17 = vmov (!%p115_p9), 0.0   ;;  %v1274_v50 = vlaneseq (!%p115_p9) }
   0xe   : > { %118 = sbr.rel (%p115_p9) target bundleno = 1272 (0x4f8), region = 28  ;;  %2226 = vmatprep.mubr.msk.f32.mxu0 (!%p115_p9), %vm164_vm0, %v140_v0  ;;  %v143_v4 = vld [vmem:[%s2848_s1 + $0x18] sm:$0xff] (!%p115_p9)  ;;  %v144_v5 = vld [vmem:[%s2848_s1 + $0x20] sm:$0xff] (!%p115_p9)  ;;  %v145_v6 = vld [vmem:[%s2848_s1 + $0x28] sm:$0xff] (!%p115_p9)  ;;  %2262 = vmatprep.subr.mxu1 (!%p115_p9), %v2486_v17  ;;  %vm2487_vm1 = vmmov (!%p115_p9), 0   ;;  %vm681_vm2 = vcmask (!%p115_p9), 64512  }
   0xf   : > { %v146_v7 = vld [vmem:[%s2848_s1 + $0x30] sm:$0xff] (!%p115_p9)  ;;  %v147_v8 = vld [vmem:[%s2848_s1 + $0x38] sm:$0xff] (!%p115_p9)  ;;  %v148_v9 = vld [vmem:[%s2848_s1 + $0x40] sm:$0xff] (!%p115_p9)  ;;  %2264 = vmatprep.mubr.msk.f32.mxu1 (!%p115_p9), %vm2487_vm1, %v2486_v17  ;;  %v1275_v51 = vshrl.u32 (!%p115_p9), %v1274_v50, 7  ;;  %v1277_v52 = vand.u32 (!%p115_p9), 127, %v1274_v50  ;;  %s2488_s8 = smov (!%p115_p9), 8  }
  0x10   : > { %v149_v10 = vld [vmem:[%s2848_s1 + $0x48] sm:$0xff] (!%p115_p9)  ;;  %v150_v11 = vld [vmem:[%s2848_s1 + $0x50] sm:$0xff] (!%p115_p9)  ;;  %v151_v12 = vld [vmem:[%s2848_s1 + $0x58] sm:$0xff] (!%p115_p9)  ;;  %s2489_s14 = smov (!%p115_p9), 16   ;;  %s2490_s16 = smov (!%p115_p9), 24   ;;  %vm2022_vm4 = vcmask (!%p115_p9), 130048  }
  0x11   : > { %v152_v13 = vld [vmem:[%s2848_s1 + $0x60] sm:$0xff] (!%p115_p9)  ;;  %v153_v14 = vld [vmem:[%s2848_s1 + $0x68] sm:$0xff] (!%p115_p9)  ;;  %v154_v15 = vld [vmem:[%s2848_s1 + $0x70] sm:$0xff] (!%p115_p9)  ;;  %vm2700_vm3 = vcmp.le.s32.totalorder (!%p115_p9), %v1277_v52, %v1275_v51  ;;  %s2491_s17 = smov (!%p115_p9), 32   ;;  %s2492_s21 = smov (!%p115_p9), 40   ;;  %vm2024_vm5 = vcmask (!%p115_p9), 195584  }
  0x12   : > { %v155_v16 = vld [vmem:[%s2848_s1 + $0x78] sm:$0xff] (!%p115_p9)  ;;  %v156_v42 = vld [vmem:[%s2848_s1 + $0x80] sm:$0xff] (!%p115_p9)  ;;  %v157_v43 = vld [vmem:[%s2848_s1 + $0x88] sm:$0xff] (!%p115_p9)  ;;  %s2493_s22 = smov (!%p115_p9), 48   ;;  %vm2027_vm6 = vcmask (!%p115_p9), 326656   ;;  %vm2029_vm7 = vcmask (!%p115_p9), 392192  }
  0x13   : > { %v158_v44 = vld [vmem:[%s2848_s1 + $0x90] sm:$0xff] (!%p115_p9)  ;;  %v159_v45 = vld [vmem:[%s2848_s1 + $0x98] sm:$0xff] (!%p115_p9)  ;;  %v160_v46 = vld [vmem:[%s2848_s1 + $0xa0] sm:$0xff] (!%p115_p9)  ;;  %s2164_s26 = sshll.u32 (!%p115_p9), %s2532_s13, 7  ;;  %vm2031_vm8 = vcmask (!%p115_p9), 457728   ;;  %vm2033_vm9 = vcmask (!%p115_p9), 523264  }
  0x14   : > { %v161_v47 = vld [vmem:[%s2848_s1 + $0xa8] sm:$0xff] (!%p115_p9)  ;;  %v162_v48 = vld [vmem:[%s2848_s1 + $0xb0] sm:$0xff] (!%p115_p9)  ;;  %v163_v49 = vld [vmem:[%s2848_s1 + $0xb8] sm:$0xff] (!%p115_p9)  ;;  %s2805_s3 = scalar_lea.hbm (!%p115_p9), %s2849_s2, %s2164_s26  ;;  %s2495_s5 = smov (!%p115_p9), [#allocation2]  }
  0x15   : > { %s136_s23 = scalar_select %p135_p10, %s2532_s13, 1 }
  0x16   : > { %s2426_s6 = sshll.u32 %s2495_s5, 4  ;;  %s2427_s6 = int_to_ptr.vmem [resolvable:$false] %s2426_s6 }
  0x17   : > { %s2113_s24 = sshll.u32 %s136_s23, 3  ;;  %s2494_s23 = smov 56  }
  0x18   : > { %s138_s27 = scalar_lea.vmem %s2847_s0, %s2113_s24  ;;  %s132_s24 = sand.u32 1, %s2476_s10  }
  0x19   : > { %v139_v1 = vld [vmem:[%s138_s27] sm:$0xff]  ;;  %s2112_s25 = sshll.u32 %s132_s24, 3  ;;  %s2036_s13 = scalar_lea.sflag [#allocation3], %s132_s24 }
  0x1a   : > { %2224 = vmatprep.subr.msk.mxu0 %vm164_vm0, %v139_v1  ;;  %s134_s27 = scalar_lea.vmem [#allocation2], %s2112_s25  ;;  %s2428_s7 = scalar_lea.vmem %s2427_s6, 256 }
  0x1b   : > { %2225 = vmatpush3.xpose.msk.msra.mxu0 %vm164_vm0, %v139_v1  ;;  %s2049_s28 = sshll.u32 %s134_s27, 4  ;;  %s2807_s28 = int_to_ptr.vmem [resolvable:$true] %s2049_s28 }
  0x1c   : > { %2327 = vmatprep.subr.mxu0 %v2486_v17  ;;  %s2422_s4 = scalar_lea.vmem %s2807_s28, 128  ;;  %p2429_p0 = scmp.lt.s32.totalorder %s2807_s28, %s2427_s6 }
  0x1d   : > { %p2423_p11 = scmp.ne.s32.totalorder %s2807_s28, %s2422_s4  ;;  %p2430_p1 = scmp.lt.s32.totalorder %s2428_s7, %s2422_s4 }
  0x1e   : > { %2227 = vmatmul.mubr.msk.f32.vlgmr.msra.gmra.mrb[0].mxu0 %vm164_vm0, %v141_v2 }
  0x1f   : > { %2229 = vmatprep.mubr.msk.f32.mxu0 %vm164_vm0, %v142_v3  ;;  %p2424_p12 = pnand %p2423_p11, %p2549_p5  ;;  %p2431_p2 = por %p2430_p1, %p2429_p0 }
  0x21   : > { %p2425_p13 = pneg %p2424_p12 }
  0x22   : > { %2230 = vmatmul.mubr.msk.f32.gmra.mrb[2].mxu0 %vm164_vm0, %v143_v4 }
  0x23   : > { %2232 = vmatprep.mubr.msk.f32.mxu0 %vm164_vm0, %v144_v5  ;;  %p2432_p3 = pnand %p2431_p2, %p2425_p13 }
  0x26   : > { %2233 = vmatmul.mubr.msk.f32.gmra.mrb[4].mxu0 %vm164_vm0, %v145_v6 }
  0x27   : > { %2235 = vmatprep.mubr.msk.f32.mxu0 %vm164_vm0, %v146_v7 }
  0x2a   : > { %2236 = vmatmul.mubr.msk.f32.gmra.mrb[6].mxu0 %vm164_vm0, %v147_v8 }
  0x2b   : > { %2238 = vmatprep.mubr.msk.f32.mxu0 %vm164_vm0, %v148_v9 }
  0x2e   : > { %2239 = vmatmul.mubr.msk.f32.gmra.mrb[8].mxu0 %vm164_vm0, %v149_v10 }
  0x2f   : > { %2241 = vmatprep.mubr.msk.f32.mxu0 %vm164_vm0, %v150_v11 }
  0x32   : > { %2242 = vmatmul.mubr.msk.f32.gmra.mrb[10].mxu0 %vm164_vm0, %v151_v12 }
  0x33   : > { %2244 = vmatprep.mubr.msk.f32.mxu0 %vm164_vm0, %v152_v13 }
  0x36   : > { %2245 = vmatmul.mubr.msk.f32.gmra.mrb[12].mxu0 %vm164_vm0, %v153_v14 }
  0x37   : > { %2247 = vmatprep.mubr.msk.f32.mxu0 %vm164_vm0, %v154_v15 }
  0x3a   : > { %2248 = vmatmul.mubr.msk.f32.gmra.mrb[14].mxu0 %vm164_vm0, %v155_v16 }
  0x3b   : > { %2250 = vmatprep.mubr.msk.f32.mxu0 %vm164_vm0, %v156_v42 }
  0x3e   : > { %2251 = vmatmul.mubr.msk.f32.gmra.mrb[16].mxu0 %vm164_vm0, %v157_v43 }
  0x3f   : > { %2253 = vmatprep.mubr.msk.f32.mxu0 %vm164_vm0, %v158_v44 }
  0x42   : > { %2254 = vmatmul.mubr.msk.f32.gmra.mrb[18].mxu0 %vm164_vm0, %v159_v45 }
  0x43   : > { %2256 = vmatprep.mubr.msk.f32.mxu0 %vm164_vm0, %v160_v46 }
  0x46   : > { %2257 = vmatmul.mubr.msk.f32.gmra.mrb[20].mxu0 %vm164_vm0, %v161_v47 }
  0x47   : > { %2259 = vmatprep.mubr.msk.f32.mxu0 %vm164_vm0, %v162_v48 }
  0x4a   : > { %2260 = vmatmul.mubr.msk.f32.gmra.mrb[22].mxu0 %vm164_vm0, %v163_v49 }
  0x4b   : > { %2329 = vmatprep.mubr.msk.f32.mxu0 %vm2487_vm1, %v2486_v17 }
  0xf1   : > { %v2228_v18 = vpop.f32.mrb[0].mxu0 }
  0xf2   : > { %v306_v19 = vpop.f32.mrb[1].mxu0 }
  0xf3   : > { %425 = vxpose.xlu0.b32.start.end [1/1] (short) (narrow) %v306_v19, 8 }
  0xf5   : > { %v2231_v20 = vpop.f32.mrb[2].mxu0 }
  0xf6   : > { %v316_v21 = vpop.f32.mrb[3].mxu0 }
  0xf7   : > { %457 = vxpose.xlu0.b32.start.end [1/1] (short) (narrow) %v2228_v18, 8  ;;  %489 = vxpose.xlu1.b32.start.end [1/1] (short) (narrow) %v316_v21, 8 }
  0xf9   : > { %v2234_v22 = vpop.f32.mrb[4].mxu0 }
  0xfa   : > { %v326_v23 = vpop.f32.mrb[5].mxu0 }
  0xfb   : > { %521 = vxpose.xlu1.b32.start.end [1/1] (short) (narrow) %v2231_v20, 8  ;;  %553 = vxpose.xlu0.b32.start.end [1/1] (short) (narrow) %v326_v23, 8 }
  0xfd   : > { %v2237_v24 = vpop.f32.mrb[6].mxu0 }
  0xfe   : > { %v336_v25 = vpop.f32.mrb[7].mxu0 }
  0xff   : > { %585 = vxpose.xlu1.b32.start.end [1/1] (short) (narrow) %v2234_v22, 8  ;;  %617 = vxpose.xlu0.b32.start.end [1/1] (short) (narrow) %v336_v25, 8 }
 0x101   : > { %v2240_v26 = vpop.f32.mrb[8].mxu0 }
 0x102   : > { %v346_v27 = vpop.f32.mrb[9].mxu0 }
 0x103   : > { %649 = vxpose.xlu1.b32.start.end [1/1] (short) (narrow) %v2237_v24, 8  ;;  %2263 = vmatpush3.msra.mxu1 %v346_v27 }
 0x104   : > { %2267 = vmatprep.subr.mxu1 %v2486_v17 }
 0x105   : > { %v2243_v28 = vpop.f32.mrb[10].mxu0 }
 0x106   : > { %v356_v29 = vpop.f32.mrb[11].mxu0 }
 0x109   : > { %v2246_v30 = vpop.f32.mrb[12].mxu0 }
 0x10a   : > { %v366_v31 = vpop.f32.mrb[13].mxu0 }
 0x10d   : > { %v2249_v32 = vpop.f32.mrb[14].mxu0 }
 0x10e   : > { %v376_v33 = vpop.f32.mrb[15].mxu0 }
 0x173   : > { %v441_v34 = vpop.trf.xlu0 }
 0x174   : > { %2265 = vmatmul.mubr.msk.f32.vlgmr.msra.gmra.mrb[0].mxu1 %vm681_vm2, %v441_v34 }
 0x175   : > { %2268 = vmatpush3.msra.mxu1 %v2240_v26  ;;  %2269 = vmatprep.mubr.msk.f32.mxu1 %vm2487_vm1, %v2486_v17 }
 0x176   : > { %2272 = vmatprep.subr.mxu1 %v2486_v17 }
 0x177   : > { %v473_v35 = vpop.trf.xlu0  ;;  %v505_v36 = vpop.trf.xlu1 }
 0x178   : > { %2270 = vmatmul.mubr.msk.f32.vlgmr.msra.gmra.mrb[2].mxu1 %vm681_vm2, %v473_v35 }
 0x179   : > { %2273 = vmatpush3.msra.mxu1 %v356_v29  ;;  %2274 = vmatprep.mubr.msk.f32.mxu1 %vm2487_vm1, %v2486_v17 }
 0x17a   : > { %2277 = vmatprep.subr.mxu1 %v2486_v17 }
 0x17b   : > { %v537_v37 = vpop.trf.xlu1  ;;  %v569_v38 = vpop.trf.xlu0 }
 0x17c   : > { %2275 = vmatmul.mubr.msk.f32.vlgmr.msra.gmra.mrb[4].mxu1 %vm681_vm2, %v505_v36 }
 0x17d   : > { %2278 = vmatpush3.msra.mxu1 %v2243_v28  ;;  %2279 = vmatprep.mubr.msk.f32.mxu1 %vm2487_vm1, %v2486_v17 }
 0x17e   : > { %2282 = vmatprep.subr.mxu1 %v2486_v17 }
 0x17f   : > { %v601_v39 = vpop.trf.xlu1  ;;  %v633_v40 = vpop.trf.xlu0 }
 0x180   : > { %2280 = vmatmul.mubr.msk.f32.vlgmr.msra.gmra.mrb[6].mxu1 %vm681_vm2, %v537_v37 }
 0x181   : > { %2283 = vmatpush3.msra.mxu1 %v366_v31  ;;  %2284 = vmatprep.mubr.msk.f32.mxu1 %vm2487_vm1, %v2486_v17  ;;  %v2728_v31 = vpop.f32.mrb[16].mxu0 }
 0x182   : > { %2287 = vmatprep.subr.mxu1 %v2486_v17 }
 0x183   : > { %v665_v41 = vpop.trf.xlu1 }
 0x184   : > { %2285 = vmatmul.mubr.msk.f32.vlgmr.msra.gmra.mrb[8].mxu1 %vm681_vm2, %v569_v38 }
 0x185   : > { %2288 = vmatpush3.msra.mxu1 %v2246_v30  ;;  %2289 = vmatprep.mubr.msk.f32.mxu1 %vm2487_vm1, %v2486_v17 }
 0x186   : > { %2292 = vmatprep.subr.mxu1 %v2486_v17 }
 0x188   : > { %2290 = vmatmul.mubr.msk.f32.vlgmr.msra.gmra.mrb[10].mxu1 %vm681_vm2, %v601_v39 }
 0x189   : > { %2293 = vmatpush3.msra.mxu1 %v376_v33  ;;  %2294 = vmatprep.mubr.msk.f32.mxu1 %vm2487_vm1, %v2486_v17 }
 0x18a   : > { %2297 = vmatprep.subr.mxu1 %v2486_v17 }
 0x18c   : > { %2295 = vmatmul.mubr.msk.f32.vlgmr.msra.gmra.mrb[12].mxu1 %vm681_vm2, %v633_v40 }
 0x18d   : > { %2298 = vmatpush3.msra.mxu1 %v2249_v32  ;;  %2299 = vmatprep.mubr.msk.f32.mxu1 %vm2487_vm1, %v2486_v17  ;;  %v386_v32 = vpop.f32.mrb[17].mxu0 }
 0x18e   : > { %2302 = vmatprep.subr.mxu1 %v2486_v17  ;;  %v2732_v33 = vpop.f32.mrb[18].mxu0 }
 0x18f   : > { %v2734_v34 = vpop.f32.mrb[19].mxu0 }
 0x190   : > { %2300 = vmatmul.mubr.msk.f32.vlgmr.msra.gmra.mrb[14].mxu1 %vm681_vm2, %v665_v41  ;;  %v2258_v35 = vpop.f32.mrb[20].mxu0 }
 0x191   : > { %2304 = vmatprep.mubr.msk.f32.mxu1 %vm2487_vm1, %v2486_v17  ;;  %v2736_v36 = vpop.f32.mrb[21].mxu0  ;;  %2328 = vmatpush3.xpose.msk.msra.mxu0 %vm681_vm2, %v2258_v35 }
 0x192   : > { %2337 = vmatprep.subr.mxu0 %v2486_v17 }
 0x194   : > { %2303 = vmatpush3.xpose.msk.msra.mxu1 %vm681_vm2, %v386_v32 }
 0x195   : > { %2307 = vmatprep.subr.mxu1 %v2486_v17 }
 0x247   : > { %v751_v53 = vpop.f32.mrb[0].mxu1 }
 0x248   : > { %v1266_v55 = vmul.f32 0.17677669, %v751_v53  ;;  %v2266_v56 = vpop.f32.mrb[1].mxu1 }
 0x24a   : > { %v1281_v57 = vsel %vm2700_vm3, %v1266_v55, -1e+30 }
 0x24b   : > { %v824_v58 = vpop.f32.mrb[2].mxu1  ;;  %v1289_v59 = vsel %vm681_vm2, %v1281_v57, -inf }
 0x24c   : > { %v1267_v60 = vmul.f32 0.17677669, %v824_v58  ;;  %1290 = vmax.xlane.f32.xlu0 %v1289_v59  ;;  %v2271_v61 = vpop.f32.mrb[3].mxu1 }
 0x24e   : > { %v1282_v62 = vsel %vm2700_vm3, %v1267_v60, -1e+30 }
 0x24f   : > { %v897_v63 = vpop.f32.mrb[4].mxu1  ;;  %v1292_v0 = vsel %vm681_vm2, %v1282_v62, -inf }
 0x250   : > { %v1268_v1 = vmul.f32 0.17677669, %v897_v63  ;;  %1293 = vmax.xlane.f32.xlu1 %v1292_v0  ;;  %v2276_v2 = vpop.f32.mrb[5].mxu1 }
 0x252   : > { %v1283_v3 = vsel %vm2700_vm3, %v1268_v1, -1e+30 }
 0x253   : > { %v970_v4 = vpop.f32.mrb[6].mxu1  ;;  %v1295_v5 = vsel %vm681_vm2, %v1283_v3, -inf }
 0x254   : > { %v1269_v6 = vmul.f32 0.17677669, %v970_v4  ;;  %1296 = vmax.xlane.f32.xlu1 %v1295_v5  ;;  %v2281_v7 = vpop.f32.mrb[7].mxu1 }
 0x256   : > { %v1284_v8 = vsel %vm2700_vm3, %v1269_v6, -1e+30 }
 0x257   : > { %v1043_v9 = vpop.f32.mrb[8].mxu1  ;;  %v1298_v10 = vsel %vm681_vm2, %v1284_v8, -inf }
 0x258   : > { %v1270_v11 = vmul.f32 0.17677669, %v1043_v9  ;;  %1299 = vmax.xlane.f32.xlu1 %v1298_v10  ;;  %v2286_v12 = vpop.f32.mrb[9].mxu1 }
 0x25a   : > { %v1285_v13 = vsel %vm2700_vm3, %v1270_v11, -1e+30 }
 0x25b   : > { %v1116_v14 = vpop.f32.mrb[10].mxu1  ;;  %v1301_v15 = vsel %vm681_vm2, %v1285_v13, -inf }
 0x25c   : > { %v1271_v16 = vmul.f32 0.17677669, %v1116_v14  ;;  %1302 = vmax.xlane.f32.xlu0 %v1301_v15  ;;  %v2291_v18 = vpop.f32.mrb[11].mxu1 }
 0x25e   : > { %v1286_v19 = vsel %vm2700_vm3, %v1271_v16, -1e+30 }
 0x25f   : > { %v1189_v20 = vpop.f32.mrb[12].mxu1  ;;  %v1304_v21 = vsel %vm681_vm2, %v1286_v19, -inf }
 0x260   : > { %v1272_v22 = vmul.f32 0.17677669, %v1189_v20  ;;  %1305 = vmax.xlane.f32.xlu1 %v1304_v21  ;;  %v2296_v23 = vpop.f32.mrb[13].mxu1 }
 0x261   : > { %v2261_v23 = vpop.f32.mrb[22].mxu0 }
 0x262   : > { %v1287_v24 = vsel %vm2700_vm3, %v1272_v22, -1e+30 }
 0x263   : > { %v1262_v25 = vpop.f32.mrb[14].mxu1  ;;  %v1307_v26 = vsel %vm681_vm2, %v1287_v24, -inf }
 0x264   : > { %v1273_v27 = vmul.f32 0.17677669, %v1262_v25  ;;  %1308 = vmax.xlane.f32.xlu0 %v1307_v26  ;;  %v2301_v28 = vpop.f32.mrb[15].mxu1 }
 0x266   : > { %v1288_v29 = vsel %vm2700_vm3, %v1273_v27, -1e+30 }
 0x267   : > { %v1310_v30 = vsel %vm681_vm2, %v1288_v29, -inf }
 0x268   : > { %1311 = vmax.xlane.f32.xlu1 %v1310_v30 }
 0x2d9   : > { %v1291_v37 = vpop.xlane.xlu0 %1290 }
 0x2da   : > { %v1313_v38 = vsub.f32 %v1281_v57, %v1291_v37 }
 0x2dc   : > { %v1321_v39 = vmul.f32 1.442695, %v1313_v38 }
 0x2dd   : > { %v1294_v40 = vpop.xlane.xlu1 %1293 }
 0x2de   : > { %2390 = vpow2.f32 %v1321_v39  ;;  %v1314_v41 = vsub.f32 %v1282_v62, %v1294_v40 }
 0x2e0   : > { %v1323_v42 = vmul.f32 1.442695, %v1314_v41 }
 0x2e1   : > { %v1297_v43 = vpop.xlane.xlu1 %1296 }
 0x2e2   : > { %2392 = vpow2.f32 %v1323_v42  ;;  %v1315_v44 = vsub.f32 %v1283_v3, %v1297_v43 }
 0x2e4   : > { %v1325_v45 = vmul.f32 1.442695, %v1315_v44 }
 0x2e5   : > { %v1300_v46 = vpop.xlane.xlu1 %1299 }
 0x2e6   : > { %2394 = vpow2.f32 %v1325_v45  ;;  %v1316_v47 = vsub.f32 %v1284_v8, %v1300_v46 }
 0x2e8   : > { %v2391_v48 = vpop.eup %2390  ;;  %v1327_v49 = vmul.f32 1.442695, %v1316_v47 }
 0x2e9   : > { %v1303_v50 = vpop.xlane.xlu0 %1302  ;;  %v1337_v51 = vsel %vm2700_vm3, %v2391_v48, 0.0 }
 0x2ea   : > { %2396 = vpow2.f32 %v1327_v49  ;;  %v1317_v52 = vsub.f32 %v1285_v13, %v1303_v50  ;;  %v1345_v53 = vsel %vm681_vm2, %v1337_v51, 0.0 }
 0x2eb   : > { %1346 = vadd.xlane.f32.xlu0 %v1345_v53 }
 0x2ec   : > { %v2393_v55 = vpop.eup %2392  ;;  %v1329_v56 = vmul.f32 1.442695, %v1317_v52 }
 0x2ed   : > { %v1306_v57 = vpop.xlane.xlu1 %1305  ;;  %v1338_v58 = vsel %vm2700_vm3, %v2393_v55, 0.0 }
 0x2ee   : > { %2398 = vpow2.f32 %v1329_v56  ;;  %v1318_v59 = vsub.f32 %v1286_v19, %v1306_v57  ;;  %v1348_v60 = vsel %vm681_vm2, %v1338_v58, 0.0 }
 0x2ef   : > { %1349 = vadd.xlane.f32.xlu1 %v1348_v60 }
 0x2f0   : > { %v2395_v61 = vpop.eup %2394  ;;  %v1331_v62 = vmul.f32 1.442695, %v1318_v59 }
 0x2f1   : > { %v1309_v63 = vpop.xlane.xlu0 %1308  ;;  %v1339_v0 = vsel %vm2700_vm3, %v2395_v61, 0.0 }
 0x2f2   : > { %2400 = vpow2.f32 %v1331_v62  ;;  %v1319_v1 = vsub.f32 %v1287_v24, %v1309_v63  ;;  %v1351_v2 = vsel %vm681_vm2, %v1339_v0, 0.0  ;;  %v416_v24 = vpop.f32.mrb[23].mxu0 }
 0x2f3   : > { %1352 = vadd.xlane.f32.xlu0 %v1351_v2 }
 0x2f4   : > { %v2397_v3 = vpop.eup %2396  ;;  %v1333_v4 = vmul.f32 1.442695, %v1319_v1 }
 0x2f5   : > { %v1312_v5 = vpop.xlane.xlu1 %1311  ;;  %v1340_v6 = vsel %vm2700_vm3, %v2397_v3, 0.0 }
 0x2f6   : > { %2402 = vpow2.f32 %v1333_v4  ;;  %v1320_v7 = vsub.f32 %v1288_v29, %v1312_v5  ;;  %v1354_v8 = vsel %vm681_vm2, %v1340_v6, 0.0 }
 0x2f7   : > { %1355 = vadd.xlane.f32.xlu1 %v1354_v8 }
 0x2f8   : > { %v2399_v9 = vpop.eup %2398  ;;  %v1335_v10 = vmul.f32 1.442695, %v1320_v7 }
 0x2f9   : > { %v1341_v11 = vsel %vm2700_vm3, %v2399_v9, 0.0 }
 0x2fa   : > { %2404 = vpow2.f32 %v1335_v10  ;;  %v1357_v12 = vsel %vm681_vm2, %v1341_v11, 0.0 }
 0x2fb   : > { %1358 = vadd.xlane.f32.xlu0 %v1357_v12 }
 0x2fc   : > { %v2401_v13 = vpop.eup %2400 }
 0x2fd   : > { %v1342_v14 = vsel %vm2700_vm3, %v2401_v13, 0.0 }
 0x2fe   : > { %v1360_v15 = vsel %vm681_vm2, %v1342_v14, 0.0 }
 0x2ff   : > { %1361 = vadd.xlane.f32.xlu1 %v1360_v15 }
 0x300   : > { %v2403_v16 = vpop.eup %2402 }
 0x301   : > { %v1343_v18 = vsel %vm2700_vm3, %v2403_v16, 0.0 }
 0x302   : > { %v1363_v19 = vsel %vm681_vm2, %v1343_v18, 0.0 }
 0x303   : > { %1364 = vadd.xlane.f32.xlu0 %v1363_v19 }
 0x304   : > { %v2405_v20 = vpop.eup %2404 }
 0x305   : > { %v1344_v21 = vsel %vm2700_vm3, %v2405_v20, 0.0 }
 0x306   : > { %v1366_v22 = vsel %vm681_vm2, %v1344_v21, 0.0 }
 0x307   : > { %1367 = vadd.xlane.f32.xlu1 %v1366_v22 }
 0x378   : > { %v1347_v25 = vpop.xlane.xlu0 %1346 }
 0x379   : > { %2406 = vrcp.f32 %v1347_v25 }
 0x37c   : > { %v1350_v26 = vpop.xlane.xlu1 %1349 }
 0x37d   : > { %2408 = vrcp.f32 %v1350_v26 }
 0x380   : > { %v1353_v27 = vpop.xlane.xlu0 %1352 }
 0x381   : > { %2410 = vrcp.f32 %v1353_v27 }
 0x383   : > { %v2407_v28 = vpop.eup %2406 }
 0x384   : > { %v1370_v29 = vmul.f32 %v2407_v28, %v1337_v51  ;;  %v1356_v30 = vpop.xlane.xlu1 %1355 }
 0x385   : > { %2412 = vrcp.f32 %v1356_v30 }
 0x386   : > { %2305 = vmatmul.mubr.msk.f32.vlgmr.msra.gmra.mrb[16].mxu1 %vm681_vm2, %v1370_v29 }
 0x387   : > { %v2409_v32 = vpop.eup %2408  ;;  %2308 = vmatpush3.xpose.msk.msra.mxu1 %vm681_vm2, %v2728_v31  ;;  %2309 = vmatprep.mubr.msk.f32.mxu1 %vm2487_vm1, %v2486_v17 }
 0x388   : > { %v1372_v54 = vmul.f32 %v2409_v32, %v1338_v58  ;;  %v1359_v35 = vpop.xlane.xlu0 %1358  ;;  %2312 = vmatprep.subr.mxu1 %v2486_v17 }
 0x389   : > { %2414 = vrcp.f32 %v1359_v35 }
 0x38a   : > { %2310 = vmatmul.mubr.msk.f32.vlgmr.msra.gmra.mrb[18].mxu1 %vm681_vm2, %v1372_v54 }
 0x38b   : > { %v2411_v37 = vpop.eup %2410  ;;  %2313 = vmatpush3.xpose.msk.msra.mxu1 %vm681_vm2, %v2734_v34  ;;  %2314 = vmatprep.mubr.msk.f32.mxu1 %vm2487_vm1, %v2486_v17 }
 0x38c   : > { %v1374_v38 = vmul.f32 %v2411_v37, %v1339_v0  ;;  %v1362_v39 = vpop.xlane.xlu1 %1361  ;;  %2317 = vmatprep.subr.mxu1 %v2486_v17 }
 0x38d   : > { %2416 = vrcp.f32 %v1362_v39 }
 0x38e   : > { %2315 = vmatmul.mubr.msk.f32.vlgmr.msra.gmra.mrb[20].mxu1 %vm681_vm2, %v1374_v38 }
 0x38f   : > { %v2413_v31 = vpop.eup %2412  ;;  %2318 = vmatpush3.xpose.msk.msra.mxu1 %vm681_vm2, %v2732_v33  ;;  %2319 = vmatprep.mubr.msk.f32.mxu1 %vm2487_vm1, %v2486_v17 }
 0x390   : > { %v1376_v40 = vmul.f32 %v2413_v31, %v1340_v6  ;;  %v1365_v41 = vpop.xlane.xlu0 %1364  ;;  %2322 = vmatprep.subr.mxu1 %v2486_v17 }
 0x391   : > { %2418 = vrcp.f32 %v1365_v41 }
 0x392   : > { %2320 = vmatmul.mubr.msk.f32.vlgmr.msra.gmra.mrb[22].mxu1 %vm681_vm2, %v1376_v40 }
 0x393   : > { %v2415_v34 = vpop.eup %2414  ;;  %2323 = vmatpush3.xpose.msk.msra.mxu1 %vm681_vm2, %v2736_v36  ;;  %2324 = vmatprep.mubr.msk.f32.mxu1 %vm2487_vm1, %v2486_v17 }
 0x394   : > { %v1378_v42 = vmul.f32 %v2415_v34, %v1341_v11  ;;  %v1368_v43 = vpop.xlane.xlu1 %1367  ;;  %2332 = vmatprep.subr.mxu1 %v2486_v17 }
 0x395   : > { %2420 = vrcp.f32 %v1368_v43 }
 0x396   : > { %2325 = vmatmul.mubr.msk.f32.vlgmr.msra.gmra.mrb[24].mxu1 %vm681_vm2, %v1378_v42 }
 0x397   : > { %v2417_v33 = vpop.eup %2416  ;;  %2333 = vmatpush3.xpose.msk.msra.mxu1 %vm681_vm2, %v416_v24  ;;  %2334 = vmatprep.mubr.msk.f32.mxu1 %vm2487_vm1, %v2486_v17 }
 0x398   : > { %v1380_v44 = vmul.f32 %v2417_v33, %v1342_v14 }
 0x39a   : > { %2330 = vmatmul.mubr.msk.f32.vlgmr.msra.gmra.mrb[24].mxu0 %vm681_vm2, %v1380_v44 }
 0x39b   : > { %v2419_v36 = vpop.eup %2418  ;;  %2338 = vmatpush3.xpose.msk.msra.mxu0 %vm681_vm2, %v2261_v23  ;;  %2339 = vmatprep.mubr.msk.f32.mxu0 %vm2487_vm1, %v2486_v17 }
 0x39c   : > { %v1382_v45 = vmul.f32 %v2419_v36, %v1343_v18 }
 0x39e   : > { %2335 = vmatmul.mubr.msk.f32.vlgmr.msra.gmra.mrb[26].mxu1 %vm681_vm2, %v1382_v45 }
 0x39f   : > { %v2421_v46 = vpop.eup %2420 }
 0x3a0   : > { %v1384_v47 = vmul.f32 %v2421_v46, %v1344_v21 }
 0x3a2   : > { %2340 = vmatmul.mubr.msk.f32.vlgmr.msra.gmra.mrb[26].mxu0 %vm681_vm2, %v1384_v47 }
 0x459   : > { %v1457_v48 = vpop.f32.mrb[16].mxu1 }
 0x45a   : > { %v2306_v49 = vpop.f32.mrb[17].mxu1 }
 0x45d   : > { %v1533_v50 = vpop.f32.mrb[18].mxu1 }
 0x45e   : > { %1994 = vrot.lane.b32.xlu0 %v1533_v50, %s2488_s8  ;;  %v2311_v51 = vpop.f32.mrb[19].mxu1 }
 0x461   : > { %v1609_v52 = vpop.f32.mrb[20].mxu1 }
 0x462   : > { %1998 = vrot.lane.b32.xlu1 %v1609_v52, %s2489_s14  ;;  %v2316_v53 = vpop.f32.mrb[21].mxu1 }
 0x465   : > { %v1685_v55 = vpop.f32.mrb[22].mxu1 }
 0x466   : > { %2002 = vrot.lane.b32.xlu1 %v1685_v55, %s2490_s16  ;;  %v2321_v17 = vpop.f32.mrb[23].mxu1 }
 0x469   : > { %v1761_v56 = vpop.f32.mrb[24].mxu1 }
 0x46a   : > { %2006 = vrot.lane.b32.xlu0 %v1761_v56, %s2491_s17  ;;  %v2326_v57 = vpop.f32.mrb[25].mxu1 }
 0x46d   : > { %v1837_v58 = vpop.f32.mrb[24].mxu0 }
 0x46e   : > { %2010 = vrot.lane.b32.xlu1 %v1837_v58, %s2492_s21  ;;  %v2331_v59 = vpop.f32.mrb[25].mxu0 }
 0x471   : > { %v1913_v60 = vpop.f32.mrb[26].mxu1 }
 0x472   : > { %2014 = vrot.lane.b32.xlu0 %v1913_v60, %s2493_s22  ;;  %v2336_v61 = vpop.f32.mrb[27].mxu1 }
 0x475   : > { %v1989_v62 = vpop.f32.mrb[26].mxu0 }
 0x476   : > { %2018 = vrot.lane.b32.xlu1 %v1989_v62, %s2494_s23  ;;  %v2341_v63 = vpop.f32.mrb[27].mxu0 }
 0x4d0   : > { %v1995_v1 = vpop.permute.xlu0 %1994 }
 0x4d1   : > { %v2021_v4 = vsel %vm681_vm2, %v1457_v48, %v1995_v1 }
 0x4d4   : > { %v1999_v0 = vpop.permute.xlu1 %1998 }
 0x4d5   : > { %v2023_v5 = vsel %vm2022_vm4, %v2021_v4, %v1999_v0 }
 0x4d8   : > { %v2003_v2 = vpop.permute.xlu1 %2002 }
 0x4d9   : > { %v2025_v7 = vsel %vm2024_vm5, %v2023_v5, %v2003_v2 }
 0x4dc   : > { %v2007_v3 = vpop.permute.xlu0 %2006 }
 0x4dd   : > { %v2026_v9 = vsel %vm164_vm0, %v2025_v7, %v2007_v3 }
 0x4e0   : > { %v2011_v6 = vpop.permute.xlu1 %2010 }
 0x4e1   : > { %v2028_v10 = vsel %vm2027_vm6, %v2026_v9, %v2011_v6 }
 0x4e4   : > { %v2015_v8 = vpop.permute.xlu0 %2014 }
 0x4e5   : > { %v2030_v11 = vsel %vm2029_vm7, %v2028_v10, %v2015_v8 }
 0x4e8   : > { %v2019_v12 = vpop.permute.xlu1 %2018 }
 0x4e9   : > { %v2032_v13 = vsel %vm2031_vm8, %v2030_v11, %v2019_v12 }
 0x4ea   : > { %2034 = vst.msk [vmem:[%s134_s27] sm:$0xff] %vm2033_vm9, %v2032_v13 }
 0x4eb   : > { %2435 = shalt.err (!%p2432_p3)
}
 0x4ec   : > { %s2436_s8 = scalar_lea.hbm %s2805_s3, 128  ;;  %s2440_s17 = scalar_lea.hbm %s2849_s2, 256 }
 0x4ed   : > { %p2437_p4 = scmp.ne.s32.totalorder %s2805_s3, %s2436_s8  ;;  %p2441_p9 = scmp.lt.u32.totalorder %s2805_s3, %s2849_s2 }
 0x4ee   : > { %p2442_p10 = scmp.lt.u32.totalorder %s2440_s17, %s2436_s8  ;;  %p2444_p12 = scmp.lt.u32.totalorder %s2436_s8, %s2805_s3 }
 0x4ef   : > { %p2438_p7 = pnand %p2437_p4, %p2549_p5 }
 0x4f0   : > { %p2443_p11 = por %p2442_p10, %p2441_p9 }
 0x4f1   : > { %p2439_p8 = pneg %p2438_p7 }
 0x4f2   : > { %p2445_p13 = por %p2444_p12, %p2443_p11 }
 0x4f4   : > { %p2446_p0 = pnand %p2445_p13, %p2439_p8 }
 0x4f6   : > { %2449 = shalt.err (!%p2446_p0)
}
 0x4f7   : > { %2342 = dma.vmem_to_hbm [thread:$0]  (%p2549_p5), %s2807_s28, 128, %s2805_s3, %s2036_s13  }
 0x4f8 PF: > { %p2348_p1 = scmp.ge.s32.totalorder %s2484_s12, 2  ;;  %s2061_s23 = sand.u32 1, %s2472_s9  }
 0x4f9   : > { %s2062_s24 = scalar_lea.sflag [#allocation3], %s2061_s23 }
 0x4fa   : > { %p2345_p2 = pnand %p2348_p1, %p2553_p6 }
 0x4fc   : > { %2467 = dma.done.wait (!%p2345_p2), %s2062_s24, 128  }
 0x4fd   : > { %2469 = vsyncadd (!%p2345_p2), %s2062_s24, 4294967168  ;;  %p12_p3 = scmp.ge.s32.totalorder %s2536_s15, 4   ;;  %s2854_s9 = smov %s2476_s10 }
 0x4fe   : > { %s2855_s10 = smov %s2480_s11  ;;  %s2856_s11 = smov %s2547_s18 }
 0x4ff   : > { %s2857_s12 = smov %s2536_s15  ;;  %14 = sbr.rel (!%p12_p3) target bundleno = 3 (0x3), region = 63 }
 0x506   :  { %2067 = vsyncpa [#allocation3], 1 }
 0x507   :  { %2069 = vsyncpa [#allocation3 + $0x1], 1 }

</bundles_post_ra>
